<compile_context>
chip_gen: v7x
topology: tpu7x:2x2x1
jax: 0.10.0
libtpu: 0.0.40
codegen_flags: <defaults>
</compile_context>

<pallas_src>
import functools

import jax
import jax.numpy as jnp
from jax import lax
from jax.experimental import pallas as pl
from jax.experimental.pallas import tpu as pltpu

_LANE = 128
_SUBLANE = 8
_MiB = 1024 * 1024
_TARGET_TILE_BYTES = 2 * _MiB  # ~2 MiB of input per DMA amortizes ~0.35us/step


def _round_up(a: int, b: int) -> int:
    return ((a + b - 1) // b) * b


def _ceil_div(a: int, b: int) -> int:
    return -(-a // b)


def _hw_info():
    """(physical VMEM bytes, tensorcores per chip) with safe fallbacks."""
    kind = ""
    try:
        kind = jax.devices()[0].device_kind.lower()
    except Exception:
        pass
    is_v7 = "v7" in kind
    vmem = None
    try:
        vmem = int(pltpu.get_tpu_info().vmem_capacity_bytes)
    except Exception:
        vmem = None
    if not vmem:
        vmem = (64 if is_v7 else 128) * _MiB
    cores = 2 if is_v7 else 1
    return vmem, cores


# --------------------------------------------------------------------------
# Single-pass kernel: the whole (S, tH) column strip is resident in VMEM.
# exp on the EUP, axis-0 (sublane) reduction on the XLU, one reciprocal per
# column, broadcast multiply on the VPU.
# --------------------------------------------------------------------------
def _softmax_axis0_kernel(x_ref, o_ref):
    e = jnp.exp(x_ref[...].astype(jnp.float32))           # (S, tH)  f32
    denom = jnp.sum(e, axis=0, keepdims=True)              # (1, tH)  f32
    o_ref[...] = (e * pl.reciprocal(denom)).astype(o_ref.dtype)


# --------------------------------------------------------------------------
# Two-pass kernel for large S: grid = (nH, 2, nS), S axis last / "arbitrary".
# Pass 0 accumulates the per-column denominator into a (1, tH) f32 scratch;
# pass 1 recomputes exp and normalizes.  The output block index is held at
# row-block 0 during pass 0, so the untouched output buffer is only flushed
# after pass 1 overwrites it with correct data.
# --------------------------------------------------------------------------
def _softmax_axis0_2pass_kernel(x_ref, o_ref, denom_ref, *,
                                n_rows, block_rows, mask_rows):
    p = pl.program_id(1)
    s = pl.program_id(2)

    @pl.when((p == 0) & (s == 0))
    def _init():
        denom_ref[...] = jnp.zeros_like(denom_ref)

    e = jnp.exp(x_ref[...].astype(jnp.float32))             # (tS, tH) f32

    @pl.when(p == 0)
    def _accumulate():
        es = e
        if mask_rows:
            # Mask pad rows of the ragged last S block so stale VMEM data
            # never contaminates the per-column sums.
            row = lax.broadcasted_iota(jnp.int32, e.shape, 0) + s * block_rows
            es = jnp.where(row < n_rows, e, 0.0)
        denom_ref[...] += jnp.sum(es, axis=0, keepdims=True)

    @pl.when(p == 1)
    def _normalize():
        o_ref[...] = (e * pl.reciprocal(denom_ref[...])).astype(o_ref.dtype)


# --------------------------------------------------------------------------
# Wrapper
# --------------------------------------------------------------------------
def softmax_axis0(x: jax.Array, *,
                  force_two_pass: bool = False,
                  block_rows: int | None = None,
                  block_cols: int | None = None) -> jax.Array:
    """exp(x) / sum(exp(x), axis=0), matching the PyTorch module exactly.

    Works for any rank >= 1 (trailing dims are flattened; columns are
    independent).  `force_two_pass` / `block_rows` / `block_cols` are tuning /
    testing knobs (block_cols must be a multiple of 128 or >= the lane extent,
    block_rows a multiple of 8 or >= the row extent).
    """
    orig_shape = x.shape
    if x.ndim == 1:
        x2 = x.reshape(x.shape[0], 1)
    elif x.ndim == 2:
        x2 = x
    else:
        x2 = x.reshape(x.shape[0], -1)
    S, H = x2.shape
    isz = jnp.dtype(x2.dtype).itemsize

    vmem_phys, cores = _hw_info()
    vmem_limit = min(vmem_phys // 2, 96 * _MiB)       # 64 MiB v5e/v6e, 32 MiB v7x
    budget = (vmem_limit * 3) // 4                    # headroom under the limit

    # Bytes per 128-lane column strip if the whole S extent stays resident:
    # 2x double-buffered input + 2x output at native dtype + ~2 f32 strips.
    per_col_bytes = S * (4 * isz + 8)
    max_th = (budget // per_col_bytes) // _LANE * _LANE

    use_single = (not force_two_pass) and max_th >= _LANE

    if use_single:
        # ----- lane-tile selection (byte-targeted, generation-aware) -------
        if block_cols is not None:
            th = block_cols if block_cols < H else H
        elif H <= _LANE:
            th = H                                     # single full-width block
        else:
            th = _round_up(max(1, _ceil_div(_TARGET_TILE_BYTES, S * isz)), _LANE)
            th = max(_LANE, min(th, max_th))
            # v7x: make sure both TensorCores get at least one tile.
            if cores > 1 and pl.cdiv(H, th) < cores:
                th = min(th, max(_LANE, _round_up(_ceil_div(H, cores), _LANE)))
            if th >= H:
                th = H                                 # full-width block is legal
        nh = pl.cdiv(H, th)

        out = pl.pallas_call(
            _softmax_axis0_kernel,
            out_shape=jax.ShapeDtypeStruct((S, H), x2.dtype),
            grid_spec=pltpu.PrefetchScalarGridSpec(
                num_scalar_prefetch=0,
                grid=(nh,),
                in_specs=[pl.BlockSpec((S, th), lambda i: (0, i))],
                out_specs=pl.BlockSpec((S, th), lambda i: (0, i)),
            ),
            compiler_params=pltpu.CompilerParams(
                dimension_semantics=("parallel",),
                vmem_limit_bytes=vmem_limit,
            ),
            cost_estimate=pl.CostEstimate(
                flops=2 * S * H,
                transcendentals=S * H,
                bytes_accessed=2 * S * H * isz,
            ),
        )(x2)
    else:
        # ----- two-pass (large S) tile selection ---------------------------
        if block_cols is not None:
            th = block_cols if block_cols < H else H
        elif H <= _LANE:
            th = H
        else:
            th = min(512, _round_up(H, _LANE))
            if cores > 1 and pl.cdiv(H, th) < cores:
                th = min(th, max(_LANE, _round_up(_ceil_div(H, cores), _LANE)))
        if block_rows is not None:
            ts = block_rows
        else:
            per_row_bytes = th * (4 * isz + 8)
            ts = max(_SUBLANE, (budget // per_row_bytes) // _SUBLANE * _SUBLANE)
        if ts >= S:
            ts = S
        nh = pl.cdiv(H, th)
        ns = pl.cdiv(S, ts)

        kernel = functools.partial(
            _softmax_axis0_2pass_kernel,
            n_rows=S, block_rows=ts, mask_rows=(S % ts != 0))

        out = pl.pallas_call(
            kernel,
            out_shape=jax.ShapeDtypeStruct((S, H), x2.dtype),
            grid_spec=pltpu.PrefetchScalarGridSpec(
                num_scalar_prefetch=0,
                grid=(nh, 2, ns),
                in_specs=[pl.BlockSpec((ts, th), lambda h, p, s: (s, h))],
                # During pass 0 the output block index is pinned to row-block 0
                # (never flushed until pass 1 rewrites it); pass 1 walks the
                # row blocks normally.
                out_specs=pl.BlockSpec((ts, th), lambda h, p, s: (s * p, h)),
                scratch_shapes=[pltpu.VMEM((1, th), jnp.float32)],
            ),
            compiler_params=pltpu.CompilerParams(
                dimension_semantics=("parallel", "arbitrary", "arbitrary"),
                vmem_limit_bytes=vmem_limit,
            ),
            cost_estimate=pl.CostEstimate(
                flops=3 * S * H,
                transcendentals=2 * S * H,
                bytes_accessed=3 * S * H * isz,
            ),
        )(x2)

    return out.reshape(orig_shape)


if __name__ == "__main__":
    # NOTE: faithful to the PyTorch module, there is NO max subtraction, so
    # inputs >~88.7 (f32) overflow exp to inf exactly like the original.
    key = jax.random.PRNGKey(0)
    k1, k2 = jax.random.split(key)

    # Primary case from the module spec: seq=8, hidden=32 (single-pass path).
    x = jax.random.normal(k1, (8, 32), dtype=jnp.float32)
    y = jax.block_until_ready(softmax_axis0(x))
    e = jnp.exp(x)
    y_ref = e / jnp.sum(e, axis=0, keepdims=True)
    assert y.shape == x.shape and y.dtype == x.dtype
    assert jnp.allclose(y, y_ref, atol=1e-6, rtol=1e-6)
    assert jnp.allclose(jnp.sum(y, axis=0), jnp.ones((32,)), atol=1e-5)

    # Ragged-H single-pass path (no wrapper pad/slice; masked edge tile).
    x2 = jax.random.normal(k2, (8, 200), dtype=jnp.float32)
    y2 = jax.block_until_ready(softmax_axis0(x2, block_cols=128))
    e2 = jnp.exp(x2)
    assert jnp.allclose(y2, e2 / jnp.sum(e2, axis=0, keepdims=True),
                        atol=1e-6, rtol=1e-6)

    # Large-S two-pass (denominator-accumulator) path, with deliberately small
    # ragged tiles in both dimensions to exercise the row masking.
    x3 = jax.random.normal(key, (50, 200), dtype=jnp.float32)
    y3 = jax.block_until_ready(
        softmax_axis0(x3, force_two_pass=True, block_rows=16, block_cols=128))
    e3 = jnp.exp(x3)
    assert jnp.allclose(y3, e3 / jnp.sum(e3, axis=0, keepdims=True),
                        atol=1e-6, rtol=1e-6)

    print("KERNEL_OK")
</pallas_src>

<mosaic_0001>
module attributes {stable_mosaic.version = 11 : i64} {
  func.func @_softmax_axis0_kernel(%arg0: i32, %arg1: memref<8x32xf32, #tpu.memory_space<vmem>>, %arg2: memref<8x32xf32, #tpu.memory_space<vmem>>) attributes {dimension_semantics = [#tpu.dimension_semantics<parallel>], iteration_bounds = array<i64: 1>, scalar_prefetch = 0 : i64, scratch_operands = 0 : i64, tpu.core_type = #tpu.core_type<tc>, window_params = [{transform_indices = @transform_0, window_bounds = array<i64: 8, 32>}, {transform_indices = @transform_1, window_bounds = array<i64: 8, 32>}]} {
    %c0 = arith.constant 0 : index
    %c0_0 = arith.constant 0 : index
    %0 = vector.load %arg1[%c0, %c0_0] : memref<8x32xf32, #tpu.memory_space<vmem>>, vector<8x32xf32>
    %1 = math.exp %0 : vector<8x32xf32>
    %cst = arith.constant dense<0.000000e+00> : vector<32xf32>
    %2 = vector.multi_reduction <add>, %1, %cst [0] : vector<8x32xf32> to vector<32xf32>
    %3 = vector.shape_cast %2 : vector<32xf32> to vector<1x32xf32>
    %4 = tpu.reciprocal %3 : vector<1x32xf32> -> vector<1x32xf32>
    %5 = vector.broadcast %4 : vector<1x32xf32> to vector<8x32xf32>
    %6 = arith.mulf %1, %5 : vector<8x32xf32>
    %c0_1 = arith.constant 0 : index
    %c0_2 = arith.constant 0 : index
    %7 = vector.load %arg2[%c0_1, %c0_2] : memref<8x32xf32, #tpu.memory_space<vmem>>, vector<8x32xf32>
    tpu.vector_store %arg2[%c0_1, %c0_2], %6 {strides = array<i32>} : memref<8x32xf32, #tpu.memory_space<vmem>>, vector<8x32xf32>,
    return
  }
  func.func @transform_0(%arg0: i32) -> (i32, i32) {
    %c0_i32 = arith.constant 0 : i32
    %c0_i32_0 = arith.constant 0 : i32
    return %c0_i32, %arg0 : i32, i32
  }
  func.func @transform_1(%arg0: i32) -> (i32, i32) {
    %c0_i32 = arith.constant 0 : i32
    %c0_i32_0 = arith.constant 0 : i32
    return %c0_i32, %arg0 : i32, i32
  }
}

</mosaic_0001>

<bundles_post_ra>
// kernel: tpu_custom_call.1
= control target key start
LH: loop header
LB: loop body
LE: loop exit
PB: predicated region body
PF: predicated region fallthrough
CT: control target
= control target key end

     0   :  { %6 = vsyncpa [#allocation3], 0  ;;  %s140_s0 = inlined_call_operand.hbm [shape: f32[8,32], index: 0, kind: input, shape index: {}]   ;;  %s141_s1 = inlined_call_operand.hbm [shape: f32[8,32], index: 1, kind: output, shape index: {}]  }
   0x1   :  { %7 = vsyncpa [#allocation4], 0  ;;  %s104_s6 = smov [#allocation2]   ;;  %s56_s10 = scalar_lea.hbm %s140_s0, 128 }
   0x2   :  { %s14_s7 = sshll.u32 %s104_s6, 4  ;;  %p57_p0 = scmp.ne.s32.totalorder %s140_s0, %s56_s10  ;;  %s15_s7 = int_to_ptr.vmem [resolvable:$true] %s14_s7 }
   0x3   :  { %p60_p1 = scmp.lt.u32.totalorder %s56_s10, %s140_s0 }
   0x5   :  { %p62_p2 = pnand %p60_p1, %p57_p0 }
   0x7   :  { %65 = shalt.err (!%p62_p2)
}
   0x8   :  { %s66_s15 = scalar_lea.vmem %s15_s7, 128  ;;  %p71_p4 = scmp.lt.s32.totalorder %s15_s7, %s15_s7 }
   0x9   :  { %p67_p3 = scmp.ne.s32.totalorder %s15_s7, %s66_s15  ;;  %p72_p5 = scmp.lt.s32.totalorder %s66_s15, %s66_s15 }
   0xb   :  { %p73_p6 = por %p72_p5, %p71_p4 }
   0xd   :  { %p74_p7 = pnand %p73_p6, %p67_p3 }
   0xf   :  { %77 = shalt.err (!%p74_p7)
}
  0x10   :  { %17 = dma.hbm_to_vmem [thread:$0]  %s140_s0, 128, %s15_s7, [#allocation3]  }
  0x11   :  { %100 = dma.done.wait [#allocation3], 128  }
  0x12   :  { %101 = vsyncadd [#allocation3], 4294967168  ;;  %v21_v0 = vld [vmem:[#allocation2] sm:$0xff]  ;;  %vm24_vm0 = vcmask 261120   ;;  %s105_s18 = smov [#allocation5]  }
  0x13   :  { %v22_v1 = vmul.f32 1.442695, %v21_v0  ;;  %s41_s19 = sshll.u32 %s105_s18, 4  ;;  %s42_s19 = int_to_ptr.vmem [resolvable:$true] %s41_s19 }
  0x14   :  { %s78_s0 = scalar_lea.vmem %s42_s19, 128  ;;  %p83_p9 = scmp.lt.s32.totalorder %s42_s19, %s42_s19 }
  0x15   :  { %52 = vpow2.f32 %v22_v1  ;;  %p79_p8 = scmp.ne.s32.totalorder %s42_s19, %s78_s0  ;;  %p84_p10 = scmp.lt.s32.totalorder %s78_s0, %s78_s0 }
  0x17   :  { %p85_p11 = por %p84_p10, %p83_p9 }
  0x19   :  { %p86_p12 = pnand %p85_p11, %p79_p8 }
  0x1f   :  { %v53_v2 = vpop.eup %52 }
  0x20   :  { %v25_v3 = vsel %vm24_vm0, %v53_v2, 0.0 }
  0x21   :  { %v26_v4 = vrot.slane %v25_v3, 4 }
  0x23   :  { %v27_v5 = vadd.f32 %v26_v4, %v25_v3 }
  0x25   :  { %v28_v6 = vrot.slane %v27_v5, 2 }
  0x27   :  { %v29_v7 = vadd.f32 %v28_v6, %v27_v5 }
  0x29   :  { %v30_v8 = vrot.slane %v29_v7, 1 }
  0x2b   :  { %v31_v9 = vadd.f32 %v30_v8, %v29_v7 }
  0x2d   :  { %54 = vrcp.f32 %v31_v9 }
  0x37   :  { %v55_v10 = vpop.eup %54 }
  0x38   :  { %v33_v11 = vmul.f32 %v55_v10, %v53_v2 }
  0x3a   :  { %34 = vst.msk [vmem:[#allocation5] sm:$0xff] %vm24_vm0, %v33_v11 }
  0x3b   :  { %89 = shalt.err (!%p86_p12)
}
  0x3c   :  { %s90_s22 = scalar_lea.hbm %s141_s1, 128 }
  0x3d   :  { %p91_p13 = scmp.ne.s32.totalorder %s141_s1, %s90_s22  ;;  %p94_p0 = scmp.lt.u32.totalorder %s90_s22, %s141_s1 }
  0x3f   :  { %p96_p1 = pnand %p94_p0, %p91_p13 }
  0x41   :  { %99 = shalt.err (!%p96_p1)
}
  0x42   :  { %44 = dma.vmem_to_hbm [thread:$0]  %s42_s19, 128, %s141_s1, [#allocation4]  }
  0x43   :  { %102 = dma.done.wait [#allocation4], 128  }
  0x44   :  { %103 = vsyncadd [#allocation4], 4294967168 }
  0x45   :  { %48 = vsyncpa [#allocation3], 1 }
  0x46   :  { %49 = vsyncpa [#allocation4], 1 }

</bundles_post_ra>
